<compile_context>
chip_gen: v5e
topology: v5e:2x2
jax: 0.10.0
libtpu: 0.0.40
codegen_flags: <defaults>
</compile_context>

<pallas_src>
import jax
import jax.numpy as jnp
from jax.experimental import pallas as pl
from jax.experimental.pallas import tpu as pltpu

PAD = 128  # lane-tile width; every feature axis is zero-padded to this
VMEM_SPEC = pl.BlockSpec(memory_space=pltpu.MemorySpace.VMEM)


# ---------------------------------------------------------------------------
# Fused Pallas kernel: conv1 -> ReLU -> conv2+skip -> ReLU -> mean pool -> cls
# ---------------------------------------------------------------------------
def _fused_gsat_kernel(
    # graph + node features (bf16)
    a_ap_ref, a_pa_ref, xa_ref, xp_ref,
    # conv1 per relation: K-concat weights [Wl1; Wr1] (bf16, [2P,P]), bias f32
    w1_ap_ref, b1_ap_ref, w1_pa_ref, b1_pa_ref,
    # conv2+skip per relation: [Wl2; Wskip; Wr2] (bf16, [3P,P]), fused bias f32
    w2_ap_ref, b2_ap_ref, w2_pa_ref, b2_pa_ref,
    # classifier MLP (first layer split over the two pooled halves)
    wc1_a_ref, wc1_p_ref, bc1_ref, wc2_ref, bc2_ref,
    # output: [1, P] f32 (real logits in the first out_dim lanes)
    out_ref,
    # VMEM scratch for the K-concatenated activations [agg | x_dst | h1_dst]
    cat_p, cat_a,
):
    f32, bf16 = jnp.float32, jnp.bfloat16
    a_ap = a_ap_ref[...]        # [n_paper, n_author]  bf16 (row-normalised)
    a_pa = a_pa_ref[...]        # [n_author, n_paper]  bf16
    xa = xa_ref[...]            # [n_author, P]        bf16
    xp = xp_ref[...]            # [n_paper, P]         bf16

    # x_dst goes to lanes [PAD:2*PAD] once; both conv layers reuse it there.
    cat_p[:, PAD:2 * PAD] = xp
    cat_a[:, PAD:2 * PAD] = xa

    # ---------------- conv1 + ReLU (one K-concat matmul per relation) -------
    # ('author','writes','paper'): mean-aggregate author feats onto papers.
    cat_p[:, 0:PAD] = jnp.dot(a_ap, xa, preferred_element_type=f32).astype(bf16)
    h1_p = jnp.maximum(
        jnp.dot(cat_p[:, 0:2 * PAD], w1_ap_ref[...],
                preferred_element_type=f32) + b1_ap_ref[...], 0.0)   # f32

    # ('paper','rev_writes','author'): mean-aggregate paper feats onto authors.
    cat_a[:, 0:PAD] = jnp.dot(a_pa, xp, preferred_element_type=f32).astype(bf16)
    h1_a = jnp.maximum(
        jnp.dot(cat_a[:, 0:2 * PAD], w1_pa_ref[...],
                preferred_element_type=f32) + b1_pa_ref[...], 0.0)   # f32

    h1_p_b = h1_p.astype(bf16)
    h1_a_b = h1_a.astype(bf16)
    cat_p[:, 2 * PAD:3 * PAD] = h1_p_b
    cat_a[:, 2 * PAD:3 * PAD] = h1_a_b

    # -------- conv2 + skip + ReLU + global mean pool (batch is all zeros) ----
    cat_p[:, 0:PAD] = jnp.dot(a_ap, h1_a_b,
                              preferred_element_type=f32).astype(bf16)
    h2_p = jnp.maximum(
        jnp.dot(cat_p[...], w2_ap_ref[...],
                preferred_element_type=f32) + b2_ap_ref[...], 0.0)
    paper_pool = jnp.mean(h2_p, axis=0, keepdims=True)               # [1,P] f32

    cat_a[:, 0:PAD] = jnp.dot(a_pa, h1_p_b,
                              preferred_element_type=f32).astype(bf16)
    h2_a = jnp.maximum(
        jnp.dot(cat_a[...], w2_pa_ref[...],
                preferred_element_type=f32) + b2_pa_ref[...], 0.0)
    author_pool = jnp.mean(h2_a, axis=0, keepdims=True)              # [1,P] f32

    # -------------- classifier MLP on concat([author_pool, paper_pool]) -----
    # cat @ W1 == author_pool @ W1[:H] + paper_pool @ W1[H:]  (no in-kernel cat)
    z = jnp.maximum(
        jnp.dot(author_pool.astype(bf16), wc1_a_ref[...],
                preferred_element_type=f32)
        + jnp.dot(paper_pool.astype(bf16), wc1_p_ref[...],
                  preferred_element_type=f32)
        + bc1_ref[...], 0.0)
    out_ref[...] = (jnp.dot(z.astype(bf16), wc2_ref[...],
                            preferred_element_type=f32) + bc2_ref[...])


def _fused_call(a_ap, a_pa, xa, xp, pk):
    n_paper, n_author = a_ap.shape
    args = (a_ap, a_pa, xa, xp,
            pk['w1_ap'], pk['b1_ap'], pk['w1_pa'], pk['b1_pa'],
            pk['w2_ap'], pk['b2_ap'], pk['w2_pa'], pk['b2_pa'],
            pk['wc1_a'], pk['wc1_p'], pk['bc1'], pk['wc2'], pk['bc2'])
    return pl.pallas_call(
        _fused_gsat_kernel,
        out_shape=jax.ShapeDtypeStruct((1, PAD), jnp.float32),
        in_specs=[VMEM_SPEC] * len(args),
        out_specs=VMEM_SPEC,
        scratch_shapes=[
            pltpu.VMEM((n_paper, 3 * PAD), jnp.bfloat16),   # cat_p
            pltpu.VMEM((n_author, 3 * PAD), jnp.bfloat16),  # cat_a
        ],
        compiler_params=pltpu.CompilerParams(
            vmem_limit_bytes=32 * 1024 * 1024),
    )(*args)


# ---------------------------------------------------------------------------
# Host-side packing / glue (padding, K-concatenation, bf16 casts)
# ---------------------------------------------------------------------------
def _pad2d(x, rows, cols):
    return jnp.pad(x, ((0, rows - x.shape[0]), (0, cols - x.shape[1])))


def pack_params(p):
    """Pad every feature axis to PAD lanes, concatenate SAGE/skip weights along
    K in the [agg | x_dst | h1_dst] lane order used by the kernel, and cast
    matmul operands to bf16.  Biases stay f32."""
    bf16 = jnp.bfloat16
    hidden = p['wl1_ap'].shape[1]

    def wpad(w):
        return _pad2d(w, PAD, PAD)

    def bpad(b):
        return _pad2d(b, 1, PAD)

    return dict(
        # conv1: [agg | x_dst] @ [Wl1; Wr1]
        w1_ap=jnp.concatenate([wpad(p['wl1_ap']), wpad(p['wr1_ap'])],
                              axis=0).astype(bf16),
        b1_ap=bpad(p['bl1_ap']),
        w1_pa=jnp.concatenate([wpad(p['wl1_pa']), wpad(p['wr1_pa'])],
                              axis=0).astype(bf16),
        b1_pa=bpad(p['bl1_pa']),
        # conv2 + skip: [agg | x_dst | h1_dst] @ [Wl2; Wskip; Wr2]
        w2_ap=jnp.concatenate([wpad(p['wl2_ap']), wpad(p['wskip_paper']),
                               wpad(p['wr2_ap'])], axis=0).astype(bf16),
        b2_ap=bpad(p['bl2_ap'] + p['bskip_paper']),
        w2_pa=jnp.concatenate([wpad(p['wl2_pa']), wpad(p['wskip_author']),
                               wpad(p['wr2_pa'])], axis=0).astype(bf16),
        b2_pa=bpad(p['bl2_pa'] + p['bskip_author']),
        # cls MLP([2*hidden, hidden, out_dim]); W1 split over the two pools
        wc1_a=wpad(p['wcls1'][:hidden]).astype(bf16),
        wc1_p=wpad(p['wcls1'][hidden:]).astype(bf16),
        bc1=bpad(p['bcls1']),
        wc2=wpad(p['wcls2']).astype(bf16),
        bc2=bpad(p['bcls2']),
    )


def build_mean_adj(src, dst, n_src, n_dst):
    """Row-normalised adjacency so that (A @ x_src) == mean neighbour aggr."""
    counts = jnp.zeros((n_dst, n_src), jnp.float32).at[dst, src].add(1.0)
    deg = counts.sum(axis=1, keepdims=True)
    return counts / jnp.maximum(deg, 1.0)


def init_params(key, in_dim, hidden, out_dim):
    ks = jax.random.split(key, 16)

    def lin(k, din, dout, scale=0.1):
        return jax.random.normal(k, (din, dout), jnp.float32) * scale

    def bias(dout):
        return jnp.zeros((1, dout), jnp.float32) + 0.01

    return dict(
        # conv1: SAGEConv per relation (Wl has bias, Wr has none — PyG default)
        wl1_ap=lin(ks[0], in_dim, hidden), bl1_ap=bias(hidden),
        wr1_ap=lin(ks[1], in_dim, hidden),
        wl1_pa=lin(ks[2], in_dim, hidden), bl1_pa=bias(hidden),
        wr1_pa=lin(ks[3], in_dim, hidden),
        # conv2
        wl2_ap=lin(ks[4], hidden, hidden), bl2_ap=bias(hidden),
        wr2_ap=lin(ks[5], hidden, hidden),
        wl2_pa=lin(ks[6], hidden, hidden), bl2_pa=bias(hidden),
        wr2_pa=lin(ks[7], hidden, hidden),
        # skip linears
        wskip_author=lin(ks[8], in_dim, hidden), bskip_author=bias(hidden),
        wskip_paper=lin(ks[9], in_dim, hidden), bskip_paper=bias(hidden),
        # cls MLP([2*hidden, hidden, out_dim])
        wcls1=lin(ks[10], 2 * hidden, hidden), bcls1=bias(hidden),
        wcls2=lin(ks[11], hidden, out_dim), bcls2=bias(out_dim),
    )


def gsat_hetero_forward(params, x_author, x_paper, a_ap, a_pa):
    """a_ap: [n_paper, n_author] adjacency for ('author','writes','paper');
       a_pa: [n_author, n_paper] adjacency for the reverse relation."""
    out_dim = params['wcls2'].shape[1]
    pk = pack_params(params)  # trivial host-side pad/concat/cast
    xa = _pad2d(x_author, x_author.shape[0], PAD).astype(jnp.bfloat16)
    xp = _pad2d(x_paper, x_paper.shape[0], PAD).astype(jnp.bfloat16)
    logits_pad = _fused_call(a_ap.astype(jnp.bfloat16),
                             a_pa.astype(jnp.bfloat16), xa, xp, pk)
    logits = logits_pad[:, :out_dim]
    alpha_dict = {}  # matches the reference: empty attention dict
    return logits, alpha_dict


# ---------------------------------------------------------------------------
# Pure-JAX f32 reference (mirrors the PyTorch forward) for a tolerance check
# ---------------------------------------------------------------------------
def reference_forward(p, x_author, x_paper, a_ap, a_pa):
    relu = lambda v: jnp.maximum(v, 0.0)
    h1_p = relu(a_ap @ x_author @ p['wl1_ap'] + p['bl1_ap']
                + x_paper @ p['wr1_ap'])
    h1_a = relu(a_pa @ x_paper @ p['wl1_pa'] + p['bl1_pa']
                + x_author @ p['wr1_pa'])
    h2_p = relu(a_ap @ h1_a @ p['wl2_ap'] + p['bl2_ap'] + h1_p @ p['wr2_ap']
                + x_paper @ p['wskip_paper'] + p['bskip_paper'])
    h2_a = relu(a_pa @ h1_p @ p['wl2_pa'] + p['bl2_pa'] + h1_a @ p['wr2_pa']
                + x_author @ p['wskip_author'] + p['bskip_author'])
    author_pool = h2_a.mean(axis=0, keepdims=True)
    paper_pool = h2_p.mean(axis=0, keepdims=True)
    z = relu(jnp.concatenate([author_pool, paper_pool], axis=-1)
             @ p['wcls1'] + p['bcls1'])
    return z @ p['wcls2'] + p['bcls2']


if __name__ == "__main__":
    in_dim, hidden, out_dim = 32, 32, 4
    n_author, n_paper, n_edges = 16, 24, 48

    key = jax.random.PRNGKey(0)
    k_xa, k_xp, k_src, k_dst, k_par = jax.random.split(key, 5)

    x_author = jax.random.normal(k_xa, (n_author, in_dim), jnp.float32)
    x_paper = jax.random.normal(k_xp, (n_paper, in_dim), jnp.float32)

    # edge_index for ('author','writes','paper'); reverse relation uses the
    # transposed edge list.
    src = jax.random.randint(k_src, (n_edges,), 0, n_author)
    dst = jax.random.randint(k_dst, (n_edges,), 0, n_paper)
    a_ap = build_mean_adj(src, dst, n_author, n_paper)   # [n_paper, n_author]
    a_pa = build_mean_adj(dst, src, n_paper, n_author)   # [n_author, n_paper]

    params = init_params(k_par, in_dim, hidden, out_dim)

    fwd = jax.jit(gsat_hetero_forward)
    logits, alpha = fwd(params, x_author, x_paper, a_ap, a_pa)
    jax.block_until_ready(logits)

    assert logits.shape == (1, out_dim)
    assert alpha == {}

    # f32 reference; kernel uses bf16 matmul operands with f32 accumulation.
    ref = reference_forward(params, x_author, x_paper, a_ap, a_pa)
    assert jnp.allclose(logits, ref, atol=2e-2, rtol=2e-2), (logits, ref)

    print("KERNEL_OK")
</pallas_src>

<mosaic_0001>
module attributes {stable_mosaic.version = 11 : i64} {
  func.func @_fused_gsat_kernel(%arg0: memref<24x16xbf16, #tpu.memory_space<vmem>>, %arg1: memref<16x24xbf16, #tpu.memory_space<vmem>>, %arg2: memref<16x128xbf16, #tpu.memory_space<vmem>>, %arg3: memref<24x128xbf16, #tpu.memory_space<vmem>>, %arg4: memref<256x128xbf16, #tpu.memory_space<vmem>>, %arg5: memref<1x128xf32, #tpu.memory_space<vmem>>, %arg6: memref<256x128xbf16, #tpu.memory_space<vmem>>, %arg7: memref<1x128xf32, #tpu.memory_space<vmem>>, %arg8: memref<384x128xbf16, #tpu.memory_space<vmem>>, %arg9: memref<1x128xf32, #tpu.memory_space<vmem>>, %arg10: memref<384x128xbf16, #tpu.memory_space<vmem>>, %arg11: memref<1x128xf32, #tpu.memory_space<vmem>>, %arg12: memref<128x128xbf16, #tpu.memory_space<vmem>>, %arg13: memref<128x128xbf16, #tpu.memory_space<vmem>>, %arg14: memref<1x128xf32, #tpu.memory_space<vmem>>, %arg15: memref<128x128xbf16, #tpu.memory_space<vmem>>, %arg16: memref<1x128xf32, #tpu.memory_space<vmem>>, %arg17: memref<1x128xf32, #tpu.memory_space<vmem>>, %arg18: memref<24x384xbf16, #tpu.memory_space<vmem>>, %arg19: memref<16x384xbf16, #tpu.memory_space<vmem>>) attributes {dimension_semantics = [], scalar_prefetch = 0 : i64, scratch_operands = 2 : i64, tpu.core_type = #tpu.core_type<tc>} {
    %c0 = arith.constant 0 : index
    %c0_0 = arith.constant 0 : index
    %0 = vector.load %arg0[%c0, %c0_0] : memref<24x16xbf16, #tpu.memory_space<vmem>>, vector<24x16xbf16>
    %c0_1 = arith.constant 0 : index
    %c0_2 = arith.constant 0 : index
    %1 = vector.load %arg1[%c0_1, %c0_2] : memref<16x24xbf16, #tpu.memory_space<vmem>>, vector<16x24xbf16>
    %c0_3 = arith.constant 0 : index
    %c0_4 = arith.constant 0 : index
    %2 = vector.load %arg2[%c0_3, %c0_4] : memref<16x128xbf16, #tpu.memory_space<vmem>>, vector<16x128xbf16>
    %c0_5 = arith.constant 0 : index
    %c0_6 = arith.constant 0 : index
    %3 = vector.load %arg3[%c0_5, %c0_6] : memref<24x128xbf16, #tpu.memory_space<vmem>>, vector<24x128xbf16>
    %c0_7 = arith.constant 0 : index
    %c128 = arith.constant 128 : index
    %4 = vector.load %arg18[%c0_7, %c128] : memref<24x384xbf16, #tpu.memory_space<vmem>>, vector<24x128xbf16>
    tpu.vector_store %arg18[%c0_7, %c128], %3 {strides = array<i32>} : memref<24x384xbf16, #tpu.memory_space<vmem>>, vector<24x128xbf16>,
    %c0_8 = arith.constant 0 : index
    %c128_9 = arith.constant 128 : index
    %5 = vector.load %arg19[%c0_8, %c128_9] : memref<16x384xbf16, #tpu.memory_space<vmem>>, vector<16x128xbf16>
    tpu.vector_store %arg19[%c0_8, %c128_9], %2 {strides = array<i32>} : memref<16x384xbf16, #tpu.memory_space<vmem>>, vector<16x128xbf16>,
    %cst = arith.constant dense<0.000000e+00> : vector<24x128xf32>
    %6 = tpu.matmul %0, %2, %cst {dimension_numbers = #tpu.dot_dimension_numbers<[1], [0], [0], [1], [0, 0, 1, 1], [], []>} : vector<24x16xbf16>, vector<16x128xbf16>, vector<24x128xf32> -> vector<24x128xf32>
    %7 = arith.truncf %6 : vector<24x128xf32> to vector<24x128xbf16>
    %c0_10 = arith.constant 0 : index
    %c0_11 = arith.constant 0 : index
    %8 = vector.load %arg18[%c0_10, %c0_11] : memref<24x384xbf16, #tpu.memory_space<vmem>>, vector<24x128xbf16>
    tpu.vector_store %arg18[%c0_10, %c0_11], %7 {strides = array<i32>} : memref<24x384xbf16, #tpu.memory_space<vmem>>, vector<24x128xbf16>,
    %c0_12 = arith.constant 0 : index
    %c0_13 = arith.constant 0 : index
    %9 = vector.load %arg18[%c0_12, %c0_13] : memref<24x384xbf16, #tpu.memory_space<vmem>>, vector<24x256xbf16>
    %c0_14 = arith.constant 0 : index
    %c0_15 = arith.constant 0 : index
    %10 = vector.load %arg4[%c0_14, %c0_15] : memref<256x128xbf16, #tpu.memory_space<vmem>>, vector<256x128xbf16>
    %cst_16 = arith.constant dense<0.000000e+00> : vector<24x128xf32>
    %11 = tpu.matmul %9, %10, %cst_16 {dimension_numbers = #tpu.dot_dimension_numbers<[1], [0], [0], [1], [0, 0, 1, 1], [], []>} : vector<24x256xbf16>, vector<256x128xbf16>, vector<24x128xf32> -> vector<24x128xf32>
    %c0_17 = arith.constant 0 : index
    %c0_18 = arith.constant 0 : index
    %12 = vector.load %arg5[%c0_17, %c0_18] : memref<1x128xf32, #tpu.memory_space<vmem>>, vector<1x128xf32>
    %13 = vector.broadcast %12 : vector<1x128xf32> to vector<24x128xf32>
    %14 = arith.addf %11, %13 : vector<24x128xf32>
    %cst_19 = arith.constant 0.000000e+00 : f32
    %15 = vector.broadcast %cst_19 : f32 to vector<24x128xf32>
    %16 = arith.maximumf %14, %15 : vector<24x128xf32>
    %cst_20 = arith.constant dense<0.000000e+00> : vector<16x128xf32>
    %17 = tpu.matmul %1, %3, %cst_20 {dimension_numbers = #tpu.dot_dimension_numbers<[1], [0], [0], [1], [0, 0, 1, 1], [], []>} : vector<16x24xbf16>, vector<24x128xbf16>, vector<16x128xf32> -> vector<16x128xf32>
    %18 = arith.truncf %17 : vector<16x128xf32> to vector<16x128xbf16>
    %c0_21 = arith.constant 0 : index
    %c0_22 = arith.constant 0 : index
    %19 = vector.load %arg19[%c0_21, %c0_22] : memref<16x384xbf16, #tpu.memory_space<vmem>>, vector<16x128xbf16>
    tpu.vector_store %arg19[%c0_21, %c0_22], %18 {strides = array<i32>} : memref<16x384xbf16, #tpu.memory_space<vmem>>, vector<16x128xbf16>,
    %c0_23 = arith.constant 0 : index
    %c0_24 = arith.constant 0 : index
    %20 = vector.load %arg19[%c0_23, %c0_24] : memref<16x384xbf16, #tpu.memory_space<vmem>>, vector<16x256xbf16>
    %c0_25 = arith.constant 0 : index
    %c0_26 = arith.constant 0 : index
    %21 = vector.load %arg6[%c0_25, %c0_26] : memref<256x128xbf16, #tpu.memory_space<vmem>>, vector<256x128xbf16>
    %cst_27 = arith.constant dense<0.000000e+00> : vector<16x128xf32>
    %22 = tpu.matmul %20, %21, %cst_27 {dimension_numbers = #tpu.dot_dimension_numbers<[1], [0], [0], [1], [0, 0, 1, 1], [], []>} : vector<16x256xbf16>, vector<256x128xbf16>, vector<16x128xf32> -> vector<16x128xf32>
    %c0_28 = arith.constant 0 : index
    %c0_29 = arith.constant 0 : index
    %23 = vector.load %arg7[%c0_28, %c0_29] : memref<1x128xf32, #tpu.memory_space<vmem>>, vector<1x128xf32>
    %24 = vector.broadcast %23 : vector<1x128xf32> to vector<16x128xf32>
    %25 = arith.addf %22, %24 : vector<16x128xf32>
    %cst_30 = arith.constant 0.000000e+00 : f32
    %26 = vector.broadcast %cst_30 : f32 to vector<16x128xf32>
    %27 = arith.maximumf %25, %26 : vector<16x128xf32>
    %28 = arith.truncf %16 : vector<24x128xf32> to vector<24x128xbf16>
    %29 = arith.truncf %27 : vector<16x128xf32> to vector<16x128xbf16>
    %c0_31 = arith.constant 0 : index
    %c256 = arith.constant 256 : index
    %30 = vector.load %arg18[%c0_31, %c256] : memref<24x384xbf16, #tpu.memory_space<vmem>>, vector<24x128xbf16>
    tpu.vector_store %arg18[%c0_31, %c256], %28 {strides = array<i32>} : memref<24x384xbf16, #tpu.memory_space<vmem>>, vector<24x128xbf16>,
    %c0_32 = arith.constant 0 : index
    %c256_33 = arith.constant 256 : index
    %31 = vector.load %arg19[%c0_32, %c256_33] : memref<16x384xbf16, #tpu.memory_space<vmem>>, vector<16x128xbf16>
    tpu.vector_store %arg19[%c0_32, %c256_33], %29 {strides = array<i32>} : memref<16x384xbf16, #tpu.memory_space<vmem>>, vector<16x128xbf16>,
    %cst_34 = arith.constant dense<0.000000e+00> : vector<24x128xf32>
    %32 = tpu.matmul %0, %29, %cst_34 {dimension_numbers = #tpu.dot_dimension_numbers<[1], [0], [0], [1], [0, 0, 1, 1], [], []>} : vector<24x16xbf16>, vector<16x128xbf16>, vector<24x128xf32> -> vector<24x128xf32>
    %33 = arith.truncf %32 : vector<24x128xf32> to vector<24x128xbf16>
    %c0_35 = arith.constant 0 : index
    %c0_36 = arith.constant 0 : index
    %34 = vector.load %arg18[%c0_35, %c0_36] : memref<24x384xbf16, #tpu.memory_space<vmem>>, vector<24x128xbf16>
    tpu.vector_store %arg18[%c0_35, %c0_36], %33 {strides = array<i32>} : memref<24x384xbf16, #tpu.memory_space<vmem>>, vector<24x128xbf16>,
    %c0_37 = arith.constant 0 : index
    %c0_38 = arith.constant 0 : index
    %35 = vector.load %arg18[%c0_37, %c0_38] : memref<24x384xbf16, #tpu.memory_space<vmem>>, vector<24x384xbf16>
    %c0_39 = arith.constant 0 : index
    %c0_40 = arith.constant 0 : index
    %36 = vector.load %arg8[%c0_39, %c0_40] : memref<384x128xbf16, #tpu.memory_space<vmem>>, vector<384x128xbf16>
    %cst_41 = arith.constant dense<0.000000e+00> : vector<24x128xf32>
    %37 = tpu.matmul %35, %36, %cst_41 {dimension_numbers = #tpu.dot_dimension_numbers<[1], [0], [0], [1], [0, 0, 1, 1], [], []>} : vector<24x384xbf16>, vector<384x128xbf16>, vector<24x128xf32> -> vector<24x128xf32>
    %c0_42 = arith.constant 0 : index
    %c0_43 = arith.constant 0 : index
    %38 = vector.load %arg9[%c0_42, %c0_43] : memref<1x128xf32, #tpu.memory_space<vmem>>, vector<1x128xf32>
    %39 = vector.broadcast %38 : vector<1x128xf32> to vector<24x128xf32>
    %40 = arith.addf %37, %39 : vector<24x128xf32>
    %cst_44 = arith.constant 0.000000e+00 : f32
    %41 = vector.broadcast %cst_44 : f32 to vector<24x128xf32>
    %42 = arith.maximumf %40, %41 : vector<24x128xf32>
    %cst_45 = arith.constant dense<0.000000e+00> : vector<128xf32>
    %43 = vector.multi_reduction <add>, %42, %cst_45 [0] : vector<24x128xf32> to vector<128xf32>
    %44 = vector.shape_cast %43 : vector<128xf32> to vector<1x128xf32>
    %cst_46 = arith.constant 2.400000e+01 : f32
    %45 = vector.broadcast %cst_46 : f32 to vector<1x128xf32>
    %46 = arith.divf %44, %45 : vector<1x128xf32>
    %cst_47 = arith.constant dense<0.000000e+00> : vector<16x128xf32>
    %47 = tpu.matmul %1, %28, %cst_47 {dimension_numbers = #tpu.dot_dimension_numbers<[1], [0], [0], [1], [0, 0, 1, 1], [], []>} : vector<16x24xbf16>, vector<24x128xbf16>, vector<16x128xf32> -> vector<16x128xf32>
    %48 = arith.truncf %47 : vector<16x128xf32> to vector<16x128xbf16>
    %c0_48 = arith.constant 0 : index
    %c0_49 = arith.constant 0 : index
    %49 = vector.load %arg19[%c0_48, %c0_49] : memref<16x384xbf16, #tpu.memory_space<vmem>>, vector<16x128xbf16>
    tpu.vector_store %arg19[%c0_48, %c0_49], %48 {strides = array<i32>} : memref<16x384xbf16, #tpu.memory_space<vmem>>, vector<16x128xbf16>,
    %c0_50 = arith.constant 0 : index
    %c0_51 = arith.constant 0 : index
    %50 = vector.load %arg19[%c0_50, %c0_51] : memref<16x384xbf16, #tpu.memory_space<vmem>>, vector<16x384xbf16>
    %c0_52 = arith.constant 0 : index
    %c0_53 = arith.constant 0 : index
    %51 = vector.load %arg10[%c0_52, %c0_53] : memref<384x128xbf16, #tpu.memory_space<vmem>>, vector<384x128xbf16>
    %cst_54 = arith.constant dense<0.000000e+00> : vector<16x128xf32>
    %52 = tpu.matmul %50, %51, %cst_54 {dimension_numbers = #tpu.dot_dimension_numbers<[1], [0], [0], [1], [0, 0, 1, 1], [], []>} : vector<16x384xbf16>, vector<384x128xbf16>, vector<16x128xf32> -> vector<16x128xf32>
    %c0_55 = arith.constant 0 : index
    %c0_56 = arith.constant 0 : index
    %53 = vector.load %arg11[%c0_55, %c0_56] : memref<1x128xf32, #tpu.memory_space<vmem>>, vector<1x128xf32>
    %54 = vector.broadcast %53 : vector<1x128xf32> to vector<16x128xf32>
    %55 = arith.addf %52, %54 : vector<16x128xf32>
    %cst_57 = arith.constant 0.000000e+00 : f32
    %56 = vector.broadcast %cst_57 : f32 to vector<16x128xf32>
    %57 = arith.maximumf %55, %56 : vector<16x128xf32>
    %cst_58 = arith.constant dense<0.000000e+00> : vector<128xf32>
    %58 = vector.multi_reduction <add>, %57, %cst_58 [0] : vector<16x128xf32> to vector<128xf32>
    %59 = vector.shape_cast %58 : vector<128xf32> to vector<1x128xf32>
    %cst_59 = arith.constant 1.600000e+01 : f32
    %60 = vector.broadcast %cst_59 : f32 to vector<1x128xf32>
    %61 = arith.divf %59, %60 : vector<1x128xf32>
    %62 = arith.truncf %61 : vector<1x128xf32> to vector<1x128xbf16>
    %c0_60 = arith.constant 0 : index
    %c0_61 = arith.constant 0 : index
    %63 = vector.load %arg12[%c0_60, %c0_61] : memref<128x128xbf16, #tpu.memory_space<vmem>>, vector<128x128xbf16>
    %cst_62 = arith.constant dense<0.000000e+00> : vector<1x128xf32>
    %64 = tpu.matmul %62, %63, %cst_62 {dimension_numbers = #tpu.dot_dimension_numbers<[1], [0], [0], [1], [0, 0, 1, 1], [], []>} : vector<1x128xbf16>, vector<128x128xbf16>, vector<1x128xf32> -> vector<1x128xf32>
    %65 = arith.truncf %46 : vector<1x128xf32> to vector<1x128xbf16>
    %c0_63 = arith.constant 0 : index
    %c0_64 = arith.constant 0 : index
    %66 = vector.load %arg13[%c0_63, %c0_64] : memref<128x128xbf16, #tpu.memory_space<vmem>>, vector<128x128xbf16>
    %cst_65 = arith.constant dense<0.000000e+00> : vector<1x128xf32>
    %67 = tpu.matmul %65, %66, %cst_65 {dimension_numbers = #tpu.dot_dimension_numbers<[1], [0], [0], [1], [0, 0, 1, 1], [], []>} : vector<1x128xbf16>, vector<128x128xbf16>, vector<1x128xf32> -> vector<1x128xf32>
    %68 = arith.addf %64, %67 : vector<1x128xf32>
    %c0_66 = arith.constant 0 : index
    %c0_67 = arith.constant 0 : index
    %69 = vector.load %arg14[%c0_66, %c0_67] : memref<1x128xf32, #tpu.memory_space<vmem>>, vector<1x128xf32>
    %70 = arith.addf %68, %69 : vector<1x128xf32>
    %cst_68 = arith.constant 0.000000e+00 : f32
    %71 = vector.broadcast %cst_68 : f32 to vector<1x128xf32>
    %72 = arith.maximumf %70, %71 : vector<1x128xf32>
    %73 = arith.truncf %72 : vector<1x128xf32> to vector<1x128xbf16>
    %c0_69 = arith.constant 0 : index
    %c0_70 = arith.constant 0 : index
    %74 = vector.load %arg15[%c0_69, %c0_70] : memref<128x128xbf16, #tpu.memory_space<vmem>>, vector<128x128xbf16>
    %cst_71 = arith.constant dense<0.000000e+00> : vector<1x128xf32>
    %75 = tpu.matmul %73, %74, %cst_71 {dimension_numbers = #tpu.dot_dimension_numbers<[1], [0], [0], [1], [0, 0, 1, 1], [], []>} : vector<1x128xbf16>, vector<128x128xbf16>, vector<1x128xf32> -> vector<1x128xf32>
    %c0_72 = arith.constant 0 : index
    %c0_73 = arith.constant 0 : index
    %76 = vector.load %arg16[%c0_72, %c0_73] : memref<1x128xf32, #tpu.memory_space<vmem>>, vector<1x128xf32>
    %77 = arith.addf %75, %76 : vector<1x128xf32>
    %c0_74 = arith.constant 0 : index
    %c0_75 = arith.constant 0 : index
    %78 = vector.load %arg17[%c0_74, %c0_75] : memref<1x128xf32, #tpu.memory_space<vmem>>, vector<1x128xf32>
    tpu.vector_store %arg17[%c0_74, %c0_75], %77 {strides = array<i32>} : memref<1x128xf32, #tpu.memory_space<vmem>>, vector<1x128xf32>,
    return
  }
}

</mosaic_0001>

<bundles_post_ra>
// kernel: gsat_hetero_forward.1
= control target key start
LH: loop header
LB: loop body
LE: loop exit
PB: predicated region body
PF: predicated region fallthrough
CT: control target
= control target key end

     0   :  { %s2543_s0 = inlined_call_operand.vmem [shape: bf16[24,16], index: 0, kind: input, shape index: {}]   ;;  %s2544_s1 = inlined_call_operand.vmem [shape: bf16[16,24], index: 1, kind: input, shape index: {}]   ;;  %s2545_s2 = inlined_call_operand.vmem [shape: bf16[16,128], index: 2, kind: input, shape index: {}]   ;;  %s2546_s3 = inlined_call_operand.vmem [shape: bf16[24,128], index: 3, kind: input, shape index: {}]   ;;  %s2547_s4 = inlined_call_operand.vmem [shape: bf16[256,128], index: 4, kind: input, shape index: {}]   ;;  %s2548_s5 = inlined_call_operand.vmem [shape: f32[1,128], index: 5, kind: input, shape index: {}]   ;;  %s2549_s6 = inlined_call_operand.vmem [shape: bf16[256,128], index: 6, kind: input, shape index: {}]   ;;  %s2550_s7 = inlined_call_operand.vmem [shape: f32[1,128], index: 7, kind: input, shape index: {}]   ;;  %s2551_s8 = inlined_call_operand.vmem [shape: bf16[384,128], index: 8, kind: input, shape index: {}]   ;;  %s2552_s9 = inlined_call_operand.vmem [shape: f32[1,128], index: 9, kind: input, shape index: {}]   ;;  %s2553_s10 = inlined_call_operand.vmem [shape: bf16[384,128], index: 10, kind: input, shape index: {}]   ;;  %s2554_s11 = inlined_call_operand.vmem [shape: f32[1,128], index: 11, kind: input, shape index: {}]   ;;  %s2555_s12 = inlined_call_operand.vmem [shape: bf16[128,128], index: 12, kind: input, shape index: {}]   ;;  %s2556_s13 = inlined_call_operand.vmem [shape: bf16[128,128], index: 13, kind: input, shape index: {}]   ;;  %s2557_s14 = inlined_call_operand.vmem [shape: f32[1,128], index: 14, kind: input, shape index: {}]   ;;  %s2558_s15 = inlined_call_operand.vmem [shape: bf16[128,128], index: 15, kind: input, shape index: {}]   ;;  %s2559_s16 = inlined_call_operand.vmem [shape: f32[1,128], index: 16, kind: input, shape index: {}]   ;;  %s2560_s17 = inlined_call_operand.hbm [shape: f32[1,128], index: 17, kind: output, shape index: {}]  }
   0x1   :  { %2562 = sst [smem:[#allocation7_spill]] %s2543_s0 }
   0x2   :  { %2563 = sst [smem:[#allocation8_spill]] %s2544_s1 }
   0x3   :  { %v1905_v0 = vld [vmem:[%s2545_s2] sm:$0xff]  ;;  %v67_v1 = vld [vmem:[%s2546_s3 + $0x8] sm:$0xf]  ;;  %s2564_s0 = sld [smem:[#allocation7_spill]]  ;;  %v1924_v4 = vld [vmem:[%s2547_s4 + $0x78] sm:$0xff]  ;;  %vm87_vm0 = vcmask 130048  }
   0x4   :  { %70 = vst [vmem:[#allocation2 + $0x1c] sm:$0xf] %v67_v1  ;;  %v319_v3 = vunpack.c.l.b16 %v67_v1  ;;  %101 = vmatpush.bf16.msra.mxu0 %v1905_v0  ;;  %vm327_vm1 = vcmask 1043456   ;;  %v1916_v5 = vld [vmem:[%s2547_s4 + $0x38] sm:$0xff]  ;;  %288 = vmatpush.bf16.msra.mxu2 %v1924_v4  ;;  %v1923_v7 = vld [vmem:[%s2547_s4 + $0x70] sm:$0xff]  ;;  %v1906_v10 = vld [vmem:[%s2546_s3] sm:$0xff] }
   0x5   :  { %270 = vmatpush.bf16.msra.mxu1 %v1916_v5  ;;  %v1915_v8 = vld [vmem:[%s2547_s4 + $0x30] sm:$0xff] }
   0x6   :  { %v321_v6 = vpack.c.b16 %v319_v3, %v319_v3 }
   0x8   :  { %v329_v9 = vsel %vm327_vm1, %v321_v6, 0 }
   0x9   :  { %v2160_v2 = vld [vmem:[%s2564_s0] sm:$0xff]  ;;  %337 = vmatpush.bf16.msra.mxu3 %v329_v9 }
   0xa   :  { %1433 = vmatmul.msk.bf16.vlgmr.msra.gmra.mxu0 %vm87_vm0, %v2160_v2 }
   0xb   :  { %22 = vsyncpa [#allocation5], 0  ;;  %289 = vmatpush.bf16.msra.mxu2 %v1923_v7  ;;  %v1942_v11 = vld [vmem:[%s2549_s6 + $0x78] sm:$0xff]  ;;  %v1922_v12 = vld [vmem:[%s2547_s4 + $0x68] sm:$0xff]  ;;  %271 = vmatpush.bf16.msra.mxu1 %v1915_v8  ;;  %s2565_s20 = sld [smem:[#allocation8_spill]]  ;;  %vm323_vm2 = vcmask 195584  }
   0xc   :  { %v1914_v13 = vld [vmem:[%s2547_s4 + $0x28] sm:$0xff]  ;;  %v1941_v16 = vld [vmem:[%s2549_s6 + $0x70] sm:$0xff]  ;;  %v1921_v17 = vld [vmem:[%s2547_s4 + $0x60] sm:$0xff]  ;;  %s2060_s29 = smov [#allocation4]   ;;  %s1416_s19 = sshll.u32 %s2560_s17, 4  ;;  %s1417_s19 = int_to_ptr.hbm [resolvable:$true] %s1416_s19 }
   0xd   :  { %338 = vmatpush.bf16.msra.mxu3 %v1906_v10  ;;  %v60_v15 = vld [vmem:[%s2564_s0 + $0x8] sm:$0xf]  ;;  %v1913_v21 = vld [vmem:[%s2547_s4 + $0x20] sm:$0xff]  ;;  %v1920_v22 = vld [vmem:[%s2547_s4 + $0x58] sm:$0xff] }
   0xe   :  { %v78_v18 = vunpack.c.l.b16 %v60_v15  ;;  %v1940_v19 = vld [vmem:[%s2549_s6 + $0x68] sm:$0xff]  ;;  %v1934_v23 = vld [vmem:[%s2549_s6 + $0x38] sm:$0xff]  ;;  %v1939_v24 = vld [vmem:[%s2549_s6 + $0x60] sm:$0xff] }
   0xf   :  { %290 = vmatpush.bf16.msra.mxu2 %v1922_v12  ;;  %272 = vmatpush.bf16.msra.mxu1 %v1914_v13  ;;  %v1912_v25 = vld [vmem:[%s2547_s4 + $0x18] sm:$0xff]  ;;  %v1919_v26 = vld [vmem:[%s2547_s4 + $0x50] sm:$0xff]  ;;  %v65_v29 = vld [vmem:[%s2546_s3] sm:$0xf] }
  0x10   :  { %v2208_v20 = vpack.c.b16 %v78_v18, %v78_v18  ;;  %493 = vmatpush.bf16.msrb.mxu0 %v1934_v23  ;;  %v1933_v27 = vld [vmem:[%s2549_s6 + $0x30] sm:$0xff]  ;;  %v1938_v28 = vld [vmem:[%s2549_s6 + $0x58] sm:$0xff]  ;;  %v66_v30 = vld [vmem:[%s2546_s3 + $0x4] sm:$0xf]  ;;  %68 = vst [vmem:[#allocation2 + $0x4] sm:$0xf] %v65_v29 }
  0x11   :  { %v2192_v14 = vld [vmem:[%s2565_s20] sm:$0xff]  ;;  %507 = vmatpush.bf16.msrb.mxu3 %v1942_v11  ;;  %v1911_v31 = vld [vmem:[%s2547_s4 + $0x10] sm:$0xff]  ;;  %v1918_v32 = vld [vmem:[%s2547_s4 + $0x48] sm:$0xff]  ;;  %69 = vst [vmem:[#allocation2 + $0x10] sm:$0xf] %v66_v30 }
  0x12   :  { %1515 = vmatmul.msk.bf16.vlgmr.msra.gmra.mxu3 %vm323_vm2, %v2192_v14  ;;  %v1932_v33 = vld [vmem:[%s2549_s6 + $0x28] sm:$0xff]  ;;  %v1937_v34 = vld [vmem:[%s2549_s6 + $0x50] sm:$0xff]  ;;  %v1917_v36 = vld [vmem:[%s2547_s4 + $0x40] sm:$0xff] }
  0x13   :  { %291 = vmatpush.bf16.msra.mxu2 %v1921_v17  ;;  %273 = vmatpush.bf16.msra.mxu1 %v1913_v21  ;;  %v1910_v35 = vld [vmem:[%s2547_s4 + $0x8] sm:$0xff]  ;;  %v63_v37 = vld [vmem:[%s2545_s2] sm:$0xf]  ;;  %v64_v38 = vld [vmem:[%s2545_s2 + $0x4] sm:$0xf] }
  0x14   :  { %494 = vmatpush.bf16.msrb.mxu0 %v1933_v27  ;;  %71 = vst [vmem:[#allocation3 + $0x4] sm:$0xf] %v63_v37  ;;  %v1931_v39 = vld [vmem:[%s2549_s6 + $0x20] sm:$0xff]  ;;  %v1936_v40 = vld [vmem:[%s2549_s6 + $0x48] sm:$0xff]  ;;  %v1930_v45 = vld [vmem:[%s2549_s6 + $0x18] sm:$0xff] }
  0x15   :  { %508 = vmatpush.bf16.msrb.mxu3 %v1941_v16  ;;  %72 = vst [vmem:[#allocation3 + $0x10] sm:$0xf] %v64_v38  ;;  %v1909_v44 = vld [vmem:[%s2547_s4] sm:$0xff]  ;;  %v1929_v50 = vld [vmem:[%s2549_s6 + $0x10] sm:$0xff]  ;;  %v1928_v51 = vld [vmem:[%s2549_s6 + $0x8] sm:$0xff] }
  0x16   :  { %v1935_v46 = vld [vmem:[%s2549_s6 + $0x40] sm:$0xff]  ;;  %v1969_v55 = vld [vmem:[%s2551_s8 + $0xb8] sm:$0xff]  ;;  %v1968_v13 = vld [vmem:[%s2551_s8 + $0xb0] sm:$0xff] }
  0x17   :  { %292 = vmatpush.bf16.msra.mxu2 %v1920_v22  ;;  %274 = vmatpush.bf16.msra.mxu1 %v1912_v25  ;;  %v1907_v41 = vld [vmem:[#allocation2 + $0x4] sm:$0xf]  ;;  %v1967_v15 = vld [vmem:[%s2551_s8 + $0xa8] sm:$0xff]  ;;  %v1965_v17 = vld [vmem:[%s2551_s8 + $0x98] sm:$0xff] }
  0x18   :  { %495 = vmatpush.bf16.msrb.mxu0 %v1932_v33  ;;  %v1439_v42 = vld [vmem:[#allocation2 + $0xc] sm:$0xf0]  ;;  %v1927_v52 = vld [vmem:[%s2549_s6] sm:$0xff]  ;;  %v1996_v22 = vld [vmem:[%s2553_s10 + $0xb8] sm:$0xff] }
  0x19   :  { %509 = vmatpush.bf16.msrb.mxu3 %v1940_v19  ;;  %v1442_v43 = vor.u32 %v1907_v41, %v1439_v42  ;;  %v1966_v16 = vld [vmem:[%s2551_s8 + $0xa0] sm:$0xff]  ;;  %v1964_v18 = vld [vmem:[%s2551_s8 + $0x90] sm:$0xff]  ;;  %v1963_v19 = vld [vmem:[%s2551_s8 + $0x88] sm:$0xff] }
  0x1a   :  { %1434 = vmatmul.msk.bf16.gmra.mxu0 %vm87_vm0, %v2208_v20  ;;  %v1962_v21 = vld [vmem:[%s2551_s8 + $0x80] sm:$0xff]  ;;  %v1995_v25 = vld [vmem:[%s2553_s10 + $0xb0] sm:$0xff] }
  0x1b   :  { %293 = vmatpush.bf16.msra.mxu2 %v1919_v26  ;;  %275 = vmatpush.bf16.msra.mxu1 %v1911_v31  ;;  %v1925_v47 = vld [vmem:[#allocation3 + $0x4] sm:$0xf]  ;;  %v2024_v23 = vld [vmem:[%s2548_s5] ss:$0 sm:$0xff] }
  0x1c   :  { %496 = vmatpush.bf16.msrb.mxu0 %v1931_v39  ;;  %v1520_v48 = vld [vmem:[#allocation3 + $0xc] sm:$0xf0]  ;;  %v1993_v31 = vld [vmem:[%s2553_s10 + $0xa0] sm:$0xff] }
  0x1d   :  { %510 = vmatpush.bf16.msrb.mxu3 %v1939_v24  ;;  %v1523_v49 = vor.u32 %v1925_v47, %v1520_v48  ;;  %v2025_v38 = vld [vmem:[%s2550_s7] ss:$0 sm:$0xff]  ;;  %v1991_v39 = vld [vmem:[%s2553_s10 + $0x90] sm:$0xff]  ;;  %v1990_v47 = vld [vmem:[%s2553_s10 + $0x88] sm:$0xff] }
  0x1f   :  { %294 = vmatpush.bf16.msra.mxu2 %v1918_v32  ;;  %276 = vmatpush.bf16.msra.mxu1 %v1910_v35 }
  0x20   :  { %497 = vmatpush.bf16.msrb.mxu0 %v1930_v45 }
  0x21   :  { %511 = vmatpush.bf16.msrb.mxu3 %v1938_v28  ;;  %v1994_v28 = vld [vmem:[%s2553_s10 + $0xa8] sm:$0xff] }
  0x23   :  { %295 = vmatpush.bf16.msra.mxu2 %v1917_v36  ;;  %277 = vmatpush.bf16.msra.mxu1 %v1909_v44  ;;  %v1992_v36 = vld [vmem:[%s2553_s10 + $0x98] sm:$0xff] }
  0x24   :  { %498 = vmatpush.bf16.msrb.mxu0 %v1929_v50 }
  0x25   :  { %512 = vmatpush.bf16.msrb.mxu3 %v1937_v34 }
  0x26   :  { %296 = vmatmul.bf16.vlgmr.msra.gmra.mxu2 %v1442_v43 }
  0x28   :  { %499 = vmatpush.bf16.msrb.mxu0 %v1928_v51 }
  0x29   :  { %513 = vmatpush.bf16.msrb.mxu3 %v1936_v40 }
  0x2c   :  { %500 = vmatpush.bf16.msrb.mxu0 %v1927_v52 }
  0x2d   :  { %514 = vmatpush.bf16.msrb.mxu3 %v1935_v46 }
  0x30   :  { %515 = vmatmul.bf16.vlgmr.msrb.gmra.mxu3 %v1523_v49 }
  0x31   :  { %828 = vmatpush.bf16.msra.mxu3 %v1969_v55 }
  0x35   :  { %829 = vmatpush.bf16.msra.mxu3 %v1968_v13 }
  0x39   :  { %830 = vmatpush.bf16.msra.mxu3 %v1967_v15 }
  0x3d   :  { %831 = vmatpush.bf16.msra.mxu3 %v1966_v16  ;;  %v1961_v16 = vld [vmem:[%s2551_s8 + $0x78] sm:$0xff] }
  0x3e   :  { %810 = vmatpush.bf16.msrb.mxu2 %v1961_v16 }
  0x41   :  { %832 = vmatpush.bf16.msra.mxu3 %v1965_v17  ;;  %v1953_v17 = vld [vmem:[%s2551_s8 + $0x38] sm:$0xff] }
  0x42   :  { %792 = vmatpush.bf16.msrb.mxu1 %v1953_v17 }
  0x45   :  { %833 = vmatpush.bf16.msra.mxu3 %v1964_v18 }
  0x49   :  { %834 = vmatpush.bf16.msra.mxu3 %v1963_v19  ;;  %v1960_v19 = vld [vmem:[%s2551_s8 + $0x70] sm:$0xff] }
  0x4a   :  { %811 = vmatpush.bf16.msrb.mxu2 %v1960_v19 }
  0x4d   :  { %835 = vmatpush.bf16.msra.mxu3 %v1962_v21  ;;  %v1959_v21 = vld [vmem:[%s2551_s8 + $0x68] sm:$0xff] }
  0x4e   :  { %812 = vmatpush.bf16.msrb.mxu2 %v1959_v21  ;;  %v2011_v21 = vld [vmem:[%s2556_s13 + $0x30] sm:$0xff] }
  0x51   :  { %1139 = vmatpush.bf16.msrb.mxu3 %v1996_v22 }
  0x55   :  { %1140 = vmatpush.bf16.msrb.mxu3 %v1995_v25  ;;  %v1958_v25 = vld [vmem:[%s2551_s8 + $0x60] sm:$0xff] }
  0x56   :  { %813 = vmatpush.bf16.msrb.mxu2 %v1958_v25 }
  0x59   :  { %1141 = vmatpush.bf16.msrb.mxu3 %v1994_v28  ;;  %v1955_v28 = vld [vmem:[%s2551_s8 + $0x48] sm:$0xff] }
  0x5d   :  { %1142 = vmatpush.bf16.msrb.mxu3 %v1993_v31  ;;  %v1943_v31 = vld [vmem:[#allocation2 + $0x4] sm:$0xf] }
  0x61   :  { %1143 = vmatpush.bf16.msrb.mxu3 %v1992_v36  ;;  %v1988_v36 = vld [vmem:[%s2553_s10 + $0x78] sm:$0xff] }
  0x65   :  { %1144 = vmatpush.bf16.msrb.mxu3 %v1991_v39  ;;  %v1980_v39 = vld [vmem:[%s2553_s10 + $0x38] sm:$0xff] }
  0x69   :  { %1145 = vmatpush.bf16.msrb.mxu3 %v1990_v47  ;;  %v1977_v47 = vld [vmem:[%s2553_s10 + $0x20] sm:$0xff] }
  0x87   :  { %v103_v53 = vpop.f32.mrf.mxu0 }
  0x88   :  { %v112_v54 = vpack.c.bf16 %v103_v53, %v103_v53 }
  0x8a   :  { %115 = vst [vmem:[#allocation2] sm:$0xf] %v112_v54 }
  0x8f   :  { %v105_v56 = vpop.f32.mrf.mxu0 }
  0x90   :  { %v113_v57 = vpack.c.bf16 %v105_v56, %v105_v56  ;;  %v1989_v56 = vld [vmem:[%s2553_s10 + $0x80] sm:$0xff] }
  0x91   :  { %v1437_v60 = vld [vmem:[#allocation2] sm:$0xf]  ;;  %1146 = vmatpush.bf16.msrb.mxu3 %v1989_v56 }
  0x92   :  { %116 = vst [vmem:[#allocation2 + $0xc] sm:$0xf] %v113_v57  ;;  %v1981_v56 = vld [vmem:[%s2553_s10 + $0x40] sm:$0xff] }
  0x95   :  { %v340_v58 = vpop.f32.mrf.mxu3 }
  0x96   :  { %v345_v59 = vpack.c.bf16 %v340_v58, %v340_v58 }
  0x97   :  { %v108_v61 = vpop.f32.mrf.mxu0 }
  0x98   :  { %347 = vst [vmem:[#allocation3] sm:$0xf] %v345_v59  ;;  %v114_v62 = vpack.c.bf16 %v108_v61, %v108_v61 }
  0x99   :  { %v1908_v63 = vld [vmem:[#allocation2 + $0x8] sm:$0xf0] }
  0x9a   :  { %v1438_v0 = vor.u32 %v1908_v63, %v1437_v60  ;;  %117 = vst [vmem:[#allocation2 + $0x18] sm:$0xf] %v114_v62 }
  0x9c   :  { %278 = vmatmul.bf16.vlgmr.msra.gmra.mxu1 %v1438_v0 }
  0x9d   :  { %v342_v1 = vpop.f32.mrf.mxu3 }
  0x9e   :  { %v346_v3 = vpack.c.bf16 %v342_v1, %v342_v1 }
  0x9f   :  { %v110_v4 = vpop.f32.mrf.mxu0  ;;  %v1518_v9 = vld [vmem:[#allocation3] sm:$0xf] }
  0xa0   :  { %348 = vst [vmem:[#allocation3 + $0xc] sm:$0xf] %v346_v3 }
  0xa1   :  { %v120_v5 = vld [vmem:[#allocation2 + $0x18] sm:$0xff] }
  0xa2   :  { %v165_v6 = vunpack.c.h.b16 %v120_v5  ;;  %v164_v8 = vunpack.c.l.b16 %v120_v5 }
  0xa4   :  { %v169_v7 = vpack.c.b16 %v165_v6, %v165_v6  ;;  %v168_v12 = vpack.c.b16 %v164_v8, %v164_v8 }
  0xa6   :  { %301 = vmatmul.bf16.gmra.mxu2 %v169_v7 }
  0xa7   :  { %v1926_v10 = vld [vmem:[#allocation3 + $0x8] sm:$0xf0] }
  0xa8   :  { %v1519_v11 = vor.u32 %v1926_v10, %v1518_v9 }
  0xa9   :  { %v297_v24 = vpop.f32.mrf.mxu2 }
  0xaa   :  { %501 = vmatmul.bf16.vlgmr.msrb.gmra.mxu0 %v1519_v11 }
  0xac   :  { %283 = vmatmul.bf16.gmra.mxu1 %v168_v12 }
  0xb1   :  { %v299_v34 = vpop.f32.mrf.mxu2 }
  0xb3   :  { %v516_v40 = vpop.f32.mrf.mxu3 }
  0xbb   :  { %v518_v57 = vpop.f32.mrf.mxu3 }
 0x119   :  { %v279_v26 = vpop.f32.mrf.mxu1 }
 0x11a   :  { %v280_v27 = vadd.f32 %v2024_v23, %v279_v26  ;;  %v1957_v26 = vld [vmem:[%s2551_s8 + $0x58] sm:$0xff] }
 0x11b   :  { %814 = vmatpush.bf16.msrb.mxu2 %v1957_v26  ;;  %v2007_v26 = vld [vmem:[%s2556_s13 + $0x10] sm:$0xff] }
 0x11c   :  { %v298_v29 = vadd.f32 %v297_v24, %v280_v27  ;;  %v1956_v27 = vld [vmem:[%s2551_s8 + $0x50] sm:$0xff] }
 0x11e   :  { %v306_v30 = vmax.f32 %v298_v29, 0.0  ;;  %v1949_v29 = vld [vmem:[%s2551_s8 + $0x18] sm:$0xff] }
 0x11f   :  { %815 = vmatpush.bf16.msrb.mxu2 %v1956_v27  ;;  %v2006_v27 = vld [vmem:[%s2556_s13 + $0x8] sm:$0xff] }
 0x120   :  { %v523_v32 = vpack.c.bf16 %v306_v30, %v306_v30  ;;  %v1954_v30 = vld [vmem:[%s2551_s8 + $0x40] sm:$0xff] }
 0x121   :  { %v281_v33 = vpop.f32.mrf.mxu1 }
 0x122   :  { %528 = vst [vmem:[#allocation2 + $0x8] sm:$0xf] %v523_v32  ;;  %v282_v35 = vadd.f32 %v2024_v23, %v281_v33  ;;  %v868_v11 = vunpack.c.l.b16 %v523_v32  ;;  %v1594_v32 = vld [vmem:[#allocation2 + $0xc] sm:$0xf0] }
 0x123   :  { %816 = vmatpush.bf16.msrb.mxu2 %v1955_v28  ;;  %v1597_v33 = vor.u32 %v1943_v31, %v1594_v32  ;;  %v2026_v28 = vld [vmem:[%s2552_s9] ss:$0 sm:$0xff] }
 0x124   :  { %v300_v37 = vadd.f32 %v299_v34, %v282_v35  ;;  %v1948_v34 = vld [vmem:[%s2551_s8 + $0x10] sm:$0xff]  ;;  %v1947_v35 = vld [vmem:[%s2551_s8 + $0x8] sm:$0xff] }
 0x126   :  { %v307_v41 = vmax.f32 %v300_v37, 0.0  ;;  %v1946_v37 = vld [vmem:[%s2551_s8] sm:$0xff] }
 0x127   :  { %v502_v42 = vpop.f32.mrf.mxu0  ;;  %817 = vmatpush.bf16.msrb.mxu2 %v1954_v30  ;;  %v2003_v30 = vld [vmem:[%s2555_s12 + $0x30] sm:$0xff] }
 0x128   :  { %v524_v43 = vpack.c.bf16 %v307_v41, %v307_v41  ;;  %v503_v44 = vadd.f32 %v2025_v38, %v502_v42  ;;  %v1979_v41 = vld [vmem:[%s2553_s10 + $0x30] sm:$0xff]  ;;  %v1985_v42 = vld [vmem:[%s2553_s10 + $0x60] sm:$0xff] }
 0x129   :  { %v284_v45 = vpop.f32.mrf.mxu1  ;;  %v302_v46 = vpop.f32.mrf.mxu2  ;;  %v1600_v55 = vld [vmem:[#allocation2 + $0x8] sm:$0xf] }
 0x12a   :  { %529 = vst [vmem:[#allocation2 + $0x14] sm:$0xf] %v524_v43  ;;  %v517_v48 = vadd.f32 %v516_v40, %v503_v44  ;;  %v285_v49 = vadd.f32 %v2024_v23, %v284_v45  ;;  %v869_v12 = vunpack.c.l.b16 %v524_v43  ;;  %818 = vmatmul.bf16.vlgmr.msrb.gmra.mxu2 %v1597_v33  ;;  %v1986_v40 = vld [vmem:[%s2553_s10 + $0x68] sm:$0xff]  ;;  %v1984_v45 = vld [vmem:[%s2553_s10 + $0x58] sm:$0xff] }
 0x12b   :  { %1125 = vmatpush.bf16.msra.mxu2 %v1988_v36  ;;  %v1978_v44 = vld [vmem:[%s2553_s10 + $0x28] sm:$0xff] }
 0x12c   :  { %v521_v50 = vmax.f32 %v517_v48, 0.0  ;;  %v303_v51 = vadd.f32 %v302_v46, %v285_v49  ;;  %v871_v15 = vpack.c.b16 %v869_v12, %v868_v11  ;;  %v1983_v49 = vld [vmem:[%s2553_s10 + $0x50] sm:$0xff]  ;;  %v1970_v12 = vld [vmem:[#allocation3 + $0x4] sm:$0xf] }
 0x12e   :  { %v526_v52 = vpack.c.bf16 %v521_v50, %v521_v50  ;;  %v308_v53 = vmax.f32 %v303_v51, 0.0  ;;  %v1976_v51 = vld [vmem:[%s2553_s10 + $0x18] sm:$0xff] }
 0x12f   :  { %v504_v54 = vpop.f32.mrf.mxu0 }
 0x130   :  { %531 = vst [vmem:[#allocation3 + $0x8] sm:$0xf] %v526_v52  ;;  %v505_v58 = vadd.f32 %v2025_v38, %v504_v54  ;;  %v525_v59 = vpack.c.bf16 %v308_v53, %v308_v53  ;;  %v535_v6 = vunpack.c.l.b16 %v526_v52  ;;  %v1987_v38 = vld [vmem:[%s2553_s10 + $0x70] sm:$0xff]  ;;  %v1982_v52 = vld [vmem:[%s2553_s10 + $0x48] sm:$0xff] }
 0x131   :  { %v1945_v60 = vld [vmem:[#allocation2 + $0x10] sm:$0xf0]  ;;  %v286_v61 = vpop.f32.mrf.mxu1  ;;  %v304_v62 = vpop.f32.mrf.mxu2  ;;  %1126 = vmatpush.bf16.msra.mxu2 %v1987_v38 }
 0x132   :  { %v519_v63 = vadd.f32 %v518_v57, %v505_v58  ;;  %530 = vst [vmem:[#allocation2 + $0x20] sm:$0xf] %v525_v59  ;;  %v870_v0 = vunpack.c.l.b16 %v525_v59  ;;  %v1601_v1 = vor.u32 %v1945_v60, %v1600_v55  ;;  %v1975_v54 = vld [vmem:[%s2553_s10 + $0x10] sm:$0xff]  ;;  %v1974_v58 = vld [vmem:[%s2553_s10 + $0x8] sm:$0xff]  ;;  %v1973_v59 = vld [vmem:[%s2553_s10] sm:$0xff] }
 0x134   :  { %v522_v3 = vmax.f32 %v519_v63, 0.0  ;;  %836 = vmatmul.bf16.vlgmr.msra.gmra.mxu3 %v1601_v1  ;;  %v872_v5 = vpack.c.b16 %v870_v0, %v870_v0 }
 0x135   :  { %1127 = vmatpush.bf16.msra.mxu2 %v1986_v40 }
 0x136   :  { %v527_v4 = vpack.c.bf16 %v522_v3, %v522_v3  ;;  %v875_v10 = vsel %vm327_vm1, %v872_v5, 0 }
 0x137   :  { %v1709_v23 = vld [vmem:[#allocation3 + $0x8] sm:$0xf] }
 0x138   :  { %532 = vst [vmem:[#allocation3 + $0x14] sm:$0xf] %v527_v4  ;;  %v536_v7 = vunpack.c.l.b16 %v527_v4 }
 0x139   :  { %v568_v8 = vld [vmem:[#allocation2 + $0x20] sm:$0xf]  ;;  %1128 = vmatpush.bf16.msra.mxu2 %v1985_v42 }
 0x13a   :  { %v537_v9 = vpack.c.b16 %v536_v7, %v535_v6  ;;  %v635_v13 = vunpack.c.l.b16 %v568_v8 }
 0x13c   :  { %546 = vmatpush.bf16.msra.mxu0 %v537_v9  ;;  %v641_v18 = vpack.c.b16 %v635_v13, %v635_v13  ;;  %v1703_v13 = vld [vmem:[#allocation3 + $0xc] sm:$0xf0] }
 0x13d   :  { %1129 = vmatpush.bf16.msra.mxu2 %v1984_v45  ;;  %v1706_v16 = vor.u32 %v1970_v12, %v1703_v13 }
 0x13f   :  { %1588 = vmatmul.msk.bf16.vlgmr.msra.gmra.mxu0 %vm87_vm0, %v2160_v2  ;;  %v1952_v2 = vld [vmem:[%s2551_s8 + $0x30] sm:$0xff]  ;;  %v1972_v22 = vld [vmem:[#allocation3 + $0x10] sm:$0xf0] }
 0x140   :  { %883 = vmatpush.bf16.msrb.mxu0 %v875_v10  ;;  %793 = vmatpush.bf16.msrb.mxu1 %v1952_v2  ;;  %v1710_v24 = vor.u32 %v1972_v22, %v1709_v23  ;;  %v2012_v2 = vld [vmem:[%s2556_s13 + $0x38] sm:$0xff]  ;;  %v2010_v22 = vld [vmem:[%s2556_s13 + $0x28] sm:$0xff]  ;;  %v2009_v23 = vld [vmem:[%s2556_s13 + $0x20] sm:$0xff] }
 0x141   :  { %1130 = vmatpush.bf16.msra.mxu2 %v1983_v49 }
 0x144   :  { %884 = vmatpush.bf16.msrb.mxu0 %v871_v15  ;;  %841 = vmatmul.bf16.gmra.mxu3 %v641_v18 }
 0x145   :  { %1131 = vmatpush.bf16.msra.mxu2 %v1982_v52 }
 0x148   :  { %1252 = vmatpush.bf16.msra.mxu0 %v2012_v2 }
 0x149   :  { %1132 = vmatpush.bf16.msra.mxu2 %v1981_v56 }
 0x14c   :  { %1253 = vmatpush.bf16.msra.mxu0 %v2011_v21 }
 0x14f   :  { %1589 = vmatmul.msk.bf16.gmra.mxu0 %vm87_vm0, %v2208_v20  ;;  %v1951_v20 = vld [vmem:[%s2551_s8 + $0x28] sm:$0xff] }
 0x150   :  { %794 = vmatpush.bf16.msrb.mxu1 %v1951_v20  ;;  %1254 = vmatpush.bf16.msra.mxu0 %v2010_v22 }
 0x154   :  { %1147 = vmatmul.bf16.vlgmr.msrb.gmra.mxu3 %v1710_v24  ;;  %1255 = vmatpush.bf16.msra.mxu0 %v2009_v23  ;;  %v2008_v24 = vld [vmem:[%s2556_s13 + $0x18] sm:$0xff] }
 0x158   :  { %1256 = vmatpush.bf16.msra.mxu0 %v2008_v24 }
 0x15c   :  { %1257 = vmatpush.bf16.msra.mxu0 %v2007_v26 }
 0x15f   :  { %1698 = vmatmul.msk.bf16.vlgmr.msrb.gmra.mxu0 %vm323_vm2, %v2192_v14  ;;  %v1950_v14 = vld [vmem:[%s2551_s8 + $0x20] sm:$0xff] }
 0x160   :  { %795 = vmatpush.bf16.msrb.mxu1 %v1950_v14  ;;  %v2004_v14 = vld [vmem:[%s2555_s12 + $0x38] sm:$0xff]  ;;  %1258 = vmatpush.bf16.msra.mxu0 %v2006_v27 }
 0x164   :  { %796 = vmatpush.bf16.msrb.mxu1 %v1949_v29  ;;  %v2005_v29 = vld [vmem:[%s2556_s13] sm:$0xff] }
 0x165   :  { %1259 = vmatpush.bf16.msra.mxu0 %v2005_v29 }
 0x168   :  { %797 = vmatpush.bf16.msrb.mxu1 %v1948_v34 }
 0x16c   :  { %798 = vmatpush.bf16.msrb.mxu1 %v1947_v35  ;;  %v2002_v35 = vld [vmem:[%s2555_s12 + $0x28] sm:$0xff] }
 0x170   :  { %799 = vmatpush.bf16.msrb.mxu1 %v1946_v37  ;;  %v2058_v37 = vmov 24.0  }
 0x171   :  { %2028 = vrcp.f32 %v2058_v37 }
 0x174   :  { %1111 = vmatpush.bf16.msra.mxu1 %v1980_v39  ;;  %v2001_v39 = vld [vmem:[%s2555_s12 + $0x20] sm:$0xff] }
 0x178   :  { %1112 = vmatpush.bf16.msra.mxu1 %v1979_v41 }
 0x17c   :  { %1113 = vmatpush.bf16.msra.mxu1 %v1978_v44  ;;  %v2029_v44 = vpop.eup %2028 }
 0x17d   :  { %vm862_vm3 = vweird.f32 %v2029_v44 }
 0x180   :  { %1114 = vmatpush.bf16.msra.mxu1 %v1977_v47  ;;  %v2000_v47 = vld [vmem:[%s2555_s12 + $0x18] sm:$0xff] }
 0x184   :  { %1115 = vmatpush.bf16.msra.mxu1 %v1976_v51  ;;  %v858_v51 = vmul.f32 24.0, %v2029_v44 }
 0x188   :  { %1116 = vmatpush.bf16.msra.mxu1 %v1975_v54 }
 0x18c   :  { %1117 = vmatpush.bf16.msra.mxu1 %v1974_v58  ;;  %v859_v58 = vsub.f32 1.0, %v858_v51 }
 0x190   :  { %1118 = vmatpush.bf16.msra.mxu1 %v1973_v59 }
 0x1ad   :  { %v819_v25 = vpop.f32.mrf.mxu2 }
 0x1b5   :  { %v821_v32 = vpop.f32.mrf.mxu2 }
 0x1b7   :  { %v2417_v43 = vpop.f32.mrf.mxu3 }
 0x1bc   :  { %v548_v46 = vpop.f32.mrf.mxu0 }
 0x1bd   :  { %v557_v48 = vpack.c.bf16 %v548_v46, %v548_v46 }
 0x1bf   :  { %560 = vst [vmem:[#allocation2] sm:$0xf] %v557_v48  ;;  %v2431_v50 = vpop.f32.mrf.mxu3 }
 0x1c4   :  { %v550_v53 = vpop.f32.mrf.mxu0 }
 0x1c5   :  { %v558_v55 = vpack.c.bf16 %v550_v53, %v550_v53 }
 0x1c6   :  { %v1592_v62 = vld [vmem:[#allocation2] sm:$0xf] }
 0x1c7   :  { %561 = vst [vmem:[#allocation2 + $0xc] sm:$0xf] %v558_v55  ;;  %v2445_v57 = vpop.f32.mrf.mxu3 }
 0x1cc   :  { %v553_v60 = vpop.f32.mrf.mxu0 }
 0x1cd   :  { %v559_v61 = vpack.c.bf16 %v553_v60, %v553_v60  ;;  %v1998_v60 = vld [vmem:[%s2555_s12 + $0x8] sm:$0xff] }
 0x1ce   :  { %v1944_v63 = vld [vmem:[#allocation2 + $0x8] sm:$0xf0] }
 0x1cf   :  { %562 = vst [vmem:[#allocation2 + $0x18] sm:$0xf] %v559_v61  ;;  %v844_v0 = vpop.f32.mrf.mxu3  ;;  %v1593_v1 = vor.u32 %v1944_v63, %v1592_v62  ;;  %v860_v62 = vmul.f32 %v2029_v44, %v859_v58 }
 0x1d1   :  { %800 = vmatmul.bf16.vlgmr.msrb.gmra.mxu1 %v1593_v1  ;;  %v2027_v1 = vld [vmem:[%s2554_s11] ss:$0 sm:$0xff] }
 0x1d2   :  { %1313 = vmatpush.bf16.msrb.mxu1 %v2004_v14 }
 0x1d4   :  { %v555_v3 = vpop.f32.mrf.mxu0 }
 0x1d6   :  { %v567_v4 = vld [vmem:[#allocation2 + $0x18] sm:$0xff]  ;;  %1314 = vmatpush.bf16.msrb.mxu1 %v2003_v30 }
 0x1d7   :  { %v634_v5 = vunpack.c.h.b16 %v567_v4  ;;  %v633_v7 = vunpack.c.l.b16 %v567_v4 }
 0x1d9   :  { %v640_v6 = vpack.c.b16 %v634_v5, %v634_v5  ;;  %v639_v10 = vpack.c.b16 %v633_v7, %v633_v7  ;;  %v861_v5 = vadd.f32 %v2029_v44, %v860_v62  ;;  %v1148_v7 = vpop.f32.mrf.mxu3 }
 0x1da   :  { %1315 = vmatpush.bf16.msrb.mxu1 %v2002_v35 }
 0x1db   :  { %823 = vmatmul.bf16.gmra.mxu2 %v640_v6 }
 0x1dc   :  { %v886_v8 = vpop.f32.mrf.mxu0 }
 0x1dd   :  { %v891_v9 = vpack.c.bf16 %v886_v8, %v886_v8 }
 0x1de   :  { %1316 = vmatpush.bf16.msrb.mxu1 %v2001_v39  ;;  %v2020_v39 = vld [vmem:[%s2558_s15 + $0x38] sm:$0xff] }
 0x1df   :  { %893 = vst [vmem:[#allocation3] sm:$0xf] %v891_v9  ;;  %1395 = vmatpush.bf16.msrb.mxu2 %v2020_v39 }
 0x1e1   :  { %805 = vmatmul.bf16.gmra.mxu1 %v639_v10  ;;  %v2059_v10 = vmov 16.0   ;;  %v1150_v23 = vpop.f32.mrf.mxu3 }
 0x1e2   :  { %1317 = vmatpush.bf16.msrb.mxu1 %v2000_v47  ;;  %2030 = vrcp.f32 %v2059_v10  ;;  %v2013_v47 = vld [vmem:[%s2558_s15] sm:$0xff] }
 0x1e4   :  { %v888_v11 = vpop.f32.mrf.mxu0 }
 0x1e5   :  { %v892_v15 = vpack.c.bf16 %v888_v11, %v888_v11  ;;  %v863_v11 = vsel %vm862_vm3, %v2029_v44, %v861_v5  ;;  %v2016_v44 = vld [vmem:[%s2558_s15 + $0x18] sm:$0xff] }
 0x1e6   :  { %v1701_v17 = vld [vmem:[#allocation3] sm:$0xf] }
 0x1e7   :  { %894 = vst [vmem:[#allocation3 + $0xc] sm:$0xf] %v892_v15 }
 0x1eb   :  { %1133 = vmatmul.bf16.vlgmr.msra.gmra.mxu2 %v1706_v16 }
 0x1ee   :  { %v1971_v18 = vld [vmem:[#allocation3 + $0x8] sm:$0xf0] }
 0x1ef   :  { %v1702_v19 = vor.u32 %v1971_v18, %v1701_v17  ;;  %v2031_v17 = vpop.eup %2030 }
 0x1f0   :  { %v1163_v24 = vmul.f32 16.0, %v2031_v17  ;;  %vm1167_vm4 = vweird.f32 %v2031_v17 }
 0x1f1   :  { %1119 = vmatmul.bf16.vlgmr.msra.gmra.mxu1 %v1702_v19 }
 0x1f2   :  { %v1164_v27 = vsub.f32 1.0, %v1163_v24 }
 0x1f4   :  { %v1165_v29 = vmul.f32 %v2031_v17, %v1164_v27 }
 0x24e   :  { %v801_v20 = vpop.f32.mrf.mxu1 }
 0x24f   :  { %v802_v33 = vadd.f32 %v2026_v28, %v801_v20 }
 0x251   :  { %v820_v38 = vadd.f32 %v819_v25, %v802_v33 }
 0x253   :  { %v838_v45 = vadd.f32 %v2417_v43, %v820_v38 }
 0x255   :  { %v846_v52 = vmax.f32 %v838_v45, 0.0  ;;  %v2015_v45 = vld [vmem:[%s2558_s15 + $0x10] sm:$0xff] }
 0x256   :  { %v803_v31 = vpop.f32.mrf.mxu1 }
 0x257   :  { %v804_v34 = vadd.f32 %v2026_v28, %v803_v31 }
 0x259   :  { %v822_v36 = vadd.f32 %v821_v32, %v804_v34  ;;  %v1166_v32 = vadd.f32 %v2031_v17, %v1165_v29 }
 0x25b   :  { %v840_v40 = vadd.f32 %v2431_v50, %v822_v36  ;;  %v1999_v50 = vld [vmem:[%s2555_s12 + $0x10] sm:$0xff]  ;;  %v1168_v35 = vsel %vm1167_vm4, %v2031_v17, %v1166_v32 }
 0x25c   :  { %1318 = vmatpush.bf16.msrb.mxu1 %v1999_v50 }
 0x25d   :  { %v847_v48 = vmax.f32 %v840_v40, 0.0  ;;  %v2019_v40 = vld [vmem:[%s2558_s15 + $0x30] sm:$0xff] }
 0x25e   :  { %v806_v41 = vpop.f32.mrf.mxu1  ;;  %v824_v42 = vpop.f32.mrf.mxu2  ;;  %1396 = vmatpush.bf16.msrb.mxu2 %v2019_v40 }
 0x25f   :  { %v807_v46 = vadd.f32 %v2026_v28, %v806_v41  ;;  %v849_v54 = vadd.f32 %v847_v48, %v846_v52  ;;  %v2018_v41 = vld [vmem:[%s2558_s15 + $0x28] sm:$0xff]  ;;  %v1326_v52 = vld [vmem:[%s2557_s14] sm:$0x1] }
 0x260   :  { %1319 = vmatpush.bf16.msrb.mxu1 %v1998_v60 }
 0x261   :  { %v825_v49 = vadd.f32 %v824_v42, %v807_v46  ;;  %v2017_v42 = vld [vmem:[%s2558_s15 + $0x20] sm:$0xff]  ;;  %v2014_v46 = vld [vmem:[%s2558_s15 + $0x8] sm:$0xff]  ;;  %s1414_s15 = sshll.u32 %s2060_s29, 4  ;;  %s1415_s15 = int_to_ptr.vmem [resolvable:$true] %s1414_s15 }
 0x262   :  { %1397 = vmatpush.bf16.msrb.mxu2 %v2018_v41 }
 0x263   :  { %v843_v53 = vadd.f32 %v2445_v57, %v825_v49  ;;  %v1997_v57 = vld [vmem:[%s2555_s12] sm:$0xff] }
 0x264   :  { %1320 = vmatpush.bf16.msrb.mxu1 %v1997_v57 }
 0x265   :  { %v848_v55 = vmax.f32 %v843_v53, 0.0 }
 0x266   :  { %v808_v56 = vpop.f32.mrf.mxu1  ;;  %v826_v43 = vpop.f32.mrf.mxu2  ;;  %1398 = vmatpush.bf16.msrb.mxu2 %v2017_v42 }
 0x267   :  { %v850_v59 = vadd.f32 %v849_v54, %v848_v55  ;;  %v1346_v43 = vld [vmem:[%s2559_s16] sm:$0x1] }
 0x269   :  { %v851_v61 = vrot.slane %v850_v59, 4 }
 0x26a   :  { %1399 = vmatpush.bf16.msrb.mxu2 %v2016_v44 }
 0x26b   :  { %v852_v63 = vadd.f32 %v851_v61, %v850_v59 }
 0x26d   :  { %v853_v0 = vrot.slane %v852_v63, 2 }
 0x26e   :  { %v1120_v3 = vpop.f32.mrf.mxu1  ;;  %v1134_v4 = vpop.f32.mrf.mxu2  ;;  %1400 = vmatpush.bf16.msrb.mxu2 %v2015_v45 }
 0x26f   :  { %v854_v6 = vadd.f32 %v853_v0, %v852_v63  ;;  %v1121_v9 = vadd.f32 %v2027_v1, %v1120_v3 }
 0x271   :  { %v855_v8 = vrot.slane %v854_v6, 1  ;;  %v1135_v13 = vadd.f32 %v1134_v4, %v1121_v9 }
 0x272   :  { %1401 = vmatpush.bf16.msrb.mxu2 %v2014_v46 }
 0x273   :  { %v856_v12 = vadd.f32 %v855_v8, %v854_v6  ;;  %v1149_v21 = vadd.f32 %v1148_v7, %v1135_v13 }
 0x275   :  { %v864_v15 = vmul.f32 %v863_v11, %v856_v12  ;;  %v1153_v26 = vmax.f32 %v1149_v21, 0.0 }
 0x276   :  { %v1122_v16 = vpop.f32.mrf.mxu1  ;;  %v1136_v2 = vpop.f32.mrf.mxu2  ;;  %1402 = vmatpush.bf16.msrb.mxu2 %v2013_v47 }
 0x277   :  { %v1123_v18 = vadd.f32 %v2027_v1, %v1122_v16  ;;  %v1187_v19 = vpack.c.bf16 %v864_v15, %v864_v15 }
 0x279   :  { %v1137_v22 = vadd.f32 %v1136_v2, %v1123_v18  ;;  %1260 = vmatmul.bf16.vlgmr.msra.gmra.mxu0 %v1187_v19 }
 0x27b   :  { %v1151_v25 = vadd.f32 %v1150_v23, %v1137_v22 }
 0x27d   :  { %v1154_v20 = vmax.f32 %v1151_v25, 0.0 }
 0x27f   :  { %v1155_v14 = vadd.f32 %v1154_v20, %v1153_v26 }
 0x281   :  { %v1156_v28 = vrot.slane %v1155_v14, 4 }
 0x283   :  { %v1157_v30 = vadd.f32 %v1156_v28, %v1155_v14 }
 0x285   :  { %v1158_v31 = vrot.slane %v1157_v30, 2 }
 0x287   :  { %v1159_v33 = vadd.f32 %v1158_v31, %v1157_v30 }
 0x289   :  { %v1160_v34 = vrot.slane %v1159_v33, 1 }
 0x28b   :  { %v1161_v36 = vadd.f32 %v1160_v34, %v1159_v33 }
 0x28d   :  { %v1169_v37 = vmul.f32 %v1168_v35, %v1161_v36 }
 0x28f   :  { %v1170_v38 = vpack.c.bf16 %v1169_v37, %v1169_v37 }
 0x291   :  { %1321 = vmatmul.bf16.vlgmr.msrb.gmra.mxu1 %v1170_v38 }
 0x2f6   :  { %v1261_v48 = vpop.f32.mrf.mxu0 }
 0x2fe   :  { %v1263_v49 = vpop.f32.mrf.mxu0 }
 0x30e   :  { %v1322_v51 = vpop.f32.mrf.mxu1 }
 0x30f   :  { %v1323_v53 = vadd.f32 %v1322_v51, %v1261_v48 }
 0x311   :  { %v1327_v50 = vadd.f32 %v1326_v52, %v1323_v53 }
 0x313   :  { %v1328_v54 = vmax.f32 %v1327_v50, 0.0 }
 0x315   :  { %v1329_v55 = vpack.c.bf16 %v1328_v54, %v1328_v54 }
 0x316   :  { %v1324_v56 = vpop.f32.mrf.mxu1 }
 0x317   :  { %1403 = vmatmul.bf16.vlgmr.msrb.gmra.mxu2 %v1329_v55 }
 0x39a   :  { %v1404_v58 = vpop.f32.mrf.mxu2 }
 0x39b   :  { %v1405_v59 = vadd.f32 %v1404_v58, %v1346_v43 }
 0x39d   :  { %1408 = vst [vmem:[#allocation4] sm:$0x1] %v1405_v59 }
 0x39e   :  { %1419 = dma.vmem_to_hbm [thread:$0]  %s1415_s15, 16, %s1417_s19, [#allocation5]  }
 0x3a2   :  { %v1406_v60 = vpop.f32.mrf.mxu2 }
 0x3a3   :  { %2056 = dma.done.wait [#allocation5], 16  }
 0x3a4   :  { %2057 = vsyncadd [#allocation5], 4294967280 }
 0x3a5   :  { %1424 = vsyncpa [#allocation5], 1 }

</bundles_post_ra>
